<compile_context>
chip_gen: v7x
topology: tpu7x:2x2x1
jax: 0.10.0
libtpu: 0.0.40
codegen_flags: <defaults>
</compile_context>

<pallas_src>
import functools

import jax
import jax.numpy as jnp
from jax import lax
from jax.experimental import pallas as pl
from jax.experimental.pallas import tpu as pltpu

_MIB = 1024 * 1024


def _vmem_capacity_bytes():
    """Generation-aware physical VMEM size (128 MiB v5e/v6e, 64 MiB v7x)."""
    try:
        info = pltpu.get_tpu_info()
        cap = getattr(info, "vmem_capacity_bytes", None)
        if cap:
            return int(cap)
    except Exception:
        pass
    return 64 * _MIB  # conservative default (v7x-sized)


# ---------------------------------------------------------------------------
# Grouped path: weights VMEM-resident, one grid step handles `sps` samples.
# ---------------------------------------------------------------------------
def _grouped_kernel(idx_ref, x_ref, w_ref, b_ref, o_ref, *, sps, batch):
    # idx_ref : SMEM (B,)            per-sample routing index (scalar prefetch)
    # x_ref   : (sps, C_in, HW)      slab of samples, HW on the lane axis
    # w_ref   : (K, C_out, C_in)     ALL block weights, VMEM-resident
    # b_ref   : (K, C_out, 1)        ALL block biases,  VMEM-resident
    # o_ref   : (sps, C_out, HW)
    slab = pl.program_id(0)

    def body(s, carry):
        g = jnp.minimum(slab * sps + s, batch - 1)   # clamp ragged tail
        k = idx_ref[g]
        y = jnp.dot(w_ref[k], x_ref[s], preferred_element_type=jnp.float32)
        o_ref[s] = (y + b_ref[k]).astype(o_ref.dtype)
        return carry

    if sps <= 8:
        for s in range(sps):          # short fixed trip count: static unroll
            body(s, 0)
    else:
        lax.fori_loop(0, sps, body, 0)


# ---------------------------------------------------------------------------
# Per-sample path: gathered weight per grid step (large samples / weights).
# ---------------------------------------------------------------------------
def _persample_kernel(order_ref, idx_ref, x_ref, w_ref, b_ref, o_ref):
    # order_ref, idx_ref : SMEM scalar prefetch, consumed only by index_maps.
    # x_ref : (C_in , hw_t)   current sample's spatial tile
    # w_ref : (C_out, C_in)   selected block's 1x1-conv weight
    # b_ref : (C_out, 1)
    # o_ref : (C_out, hw_t)
    del order_ref, idx_ref
    y = jnp.dot(w_ref[...], x_ref[...], preferred_element_type=jnp.float32)
    o_ref[...] = (y + b_ref[...]).astype(o_ref.dtype)


@functools.partial(jax.jit, static_argnames=("force_path",))
def blocks_bunch_forward(x_nchw, weights, biases, block_idx, *, force_path=None):
    """x_nchw: (B, C, H, W); weights: (K, C_out, C_in); biases: (K, C_out);
    block_idx: (B,) int32 — which block handles each batch element.
    force_path: None (auto) | "grouped" | "per_sample"."""
    B, C, H, W = x_nchw.shape
    K, C_out, C_in = weights.shape
    HW = H * W
    out_dtype = x_nchw.dtype

    # bf16 switch for large channel counts; accumulation stays f32.
    use_bf16 = (C_in >= 256) and (x_nchw.dtype == jnp.float32)
    comp_dtype = jnp.bfloat16 if use_bf16 else x_nchw.dtype
    elt = jnp.dtype(comp_dtype).itemsize
    out_elt = jnp.dtype(out_dtype).itemsize

    # Pure reshape (no transpose, no extra HBM pass): (B, C, HW).
    x_f = x_nchw.reshape(B, C_in, HW).astype(comp_dtype)
    w_c = weights.astype(comp_dtype)
    b_f = biases.reshape(K, C_out, 1).astype(jnp.float32)

    # Defend against out-of-range routing indices (would drive an OOB DMA).
    # NOTE: this silently reroutes bad indices instead of raising like torch.
    idx = jnp.clip(block_idx.astype(jnp.int32), 0, K - 1)

    # ---- generation-aware budgets -----------------------------------------
    vmem_cap = _vmem_capacity_bytes()
    vmem_limit = int(vmem_cap * 3 // 4)       # ~48 MiB v7x, ~96 MiB v5e/v6e
    tile_budget = vmem_cap // 16              # ~4 MiB v7x, ~8 MiB v5e/v6e

    x_sample_bytes = C_in * HW * elt
    out_sample_bytes = C_out * HW * out_elt
    all_weight_bytes = K * C_out * C_in * elt + K * C_out * 4

    flops = 2 * B * C_out * C_in * HW
    bytes_accessed = B * (x_sample_bytes + out_sample_bytes) + all_weight_bytes
    cost = pl.CostEstimate(flops=flops, transcendentals=0,
                           bytes_accessed=bytes_accessed)

    grouped = (x_sample_bytes <= 512 * 1024) and (all_weight_bytes <= 4 * _MIB)
    if force_path == "grouped":
        grouped = True
    elif force_path == "per_sample":
        grouped = False

    # ------------------------------------------------------------------ A --
    if grouped:
        # Slab size: as many samples as fit the per-tile byte budget.
        sps = max(1, min(B, tile_budget // max(1, x_sample_bytes + out_sample_bytes)))
        grid = (pl.cdiv(B, sps),)
        # TODO(synk): for HW < 128 the output last dim is below one lane, so
        # stores are still masked per sample; a lane-dense fold of samples
        # would need an extra transpose pass and is not worth it here.

        kernel = functools.partial(_grouped_kernel, sps=sps, batch=B)
        grid_spec = pltpu.PrefetchScalarGridSpec(
            num_scalar_prefetch=1,
            grid=grid,
            in_specs=[
                # slab of samples
                pl.BlockSpec((sps, C_in, HW), lambda i, idx_r: (i, 0, 0)),
                # all weights / biases, resident (constant block -> one DMA)
                pl.BlockSpec((K, C_out, C_in), lambda i, idx_r: (0, 0, 0)),
                pl.BlockSpec((K, C_out, 1), lambda i, idx_r: (0, 0, 0)),
            ],
            out_specs=pl.BlockSpec((sps, C_out, HW), lambda i, idx_r: (i, 0, 0)),
        )
        out_f = pl.pallas_call(
            kernel,
            out_shape=jax.ShapeDtypeStruct((B, C_out, HW), out_dtype),
            grid_spec=grid_spec,
            compiler_params=pltpu.CompilerParams(
                dimension_semantics=("parallel",),
                vmem_limit_bytes=vmem_limit),
            cost_estimate=cost,
        )(idx, x_f, w_c, b_f)
        return out_f.reshape(B, C_out, H, W)

    # ------------------------------------------------------------------ B --
    # Per-sample gathered path.  Samples are visited in block-index-sorted
    # order; the permutation lives only in the index_maps (gather on read,
    # scatter on write), so consecutive grid steps reuse W[idx]/bias[idx] and
    # Pallas skips their re-DMA.
    order = jnp.argsort(idx).astype(jnp.int32)        # (B,)
    sorted_idx = jnp.take(idx, order)                 # (B,)

    # hw tile from the byte budget, accounting for triple-buffered x,
    # double-buffered out and the double-buffered weight block.
    w_block_bytes = C_out * C_in * elt + C_out * 4
    # TODO(synk): if 2*w_block_bytes alone blows the budget (C in the
    # thousands), add a third "arbitrary" grid axis tiling C_in with an f32
    # accumulator scratch instead of loading the whole (C, C) weight.
    avail = max(vmem_limit - 2 * w_block_bytes - 2 * _MIB, 512 * 1024)
    per_col_bytes = 3 * C_in * elt + 2 * C_out * out_elt
    hw_budget = min(tile_budget // max(1, C_in * elt),
                    avail // max(1, per_col_bytes))
    if HW <= hw_budget:
        hw_t = HW                                   # full row (any length ok)
    else:
        hw_t = max(128, (hw_budget // 128) * 128)   # lane-aligned tile

    grid = (B, pl.cdiv(HW, hw_t))
    grid_spec = pltpu.PrefetchScalarGridSpec(
        num_scalar_prefetch=2,
        grid=grid,
        in_specs=[
            # x[order[b]], spatial tile t; extra buffer hides the exposed
            # weight+x DMA on sorted-index changes.
            pl.BlockSpec((None, C_in, hw_t),
                         lambda b, t, order, sidx: (order[b], 0, t),
                         pipeline_mode=pl.Buffered(3)),
            # W[idx[order[b]]] — constant across t; equal consecutive sorted
            # indices -> DMA skipped.
            pl.BlockSpec((None, C_out, C_in),
                         lambda b, t, order, sidx: (sidx[b], 0, 0)),
            pl.BlockSpec((None, C_out, 1),
                         lambda b, t, order, sidx: (sidx[b], 0, 0)),
        ],
        out_specs=pl.BlockSpec((None, C_out, hw_t),
                               lambda b, t, order, sidx: (order[b], 0, t)),
    )
    out_f = pl.pallas_call(
        _persample_kernel,
        out_shape=jax.ShapeDtypeStruct((B, C_out, HW), out_dtype),
        grid_spec=grid_spec,
        compiler_params=pltpu.CompilerParams(
            dimension_semantics=("parallel", "parallel"),
            vmem_limit_bytes=vmem_limit),
        cost_estimate=cost,
    )(order, sorted_idx, x_f, w_c, b_f)
    return out_f.reshape(B, C_out, H, W)


def _reference(x_nchw, weights, biases, block_idx):
    # Pure-JAX reference of the same semantics (per-sample 1x1 conv dispatch).
    B, C, H, W = x_nchw.shape
    x_f = x_nchw.reshape(B, C, H * W)
    w_sel = weights[block_idx]                  # (B, C_out, C_in)
    b_sel = biases[block_idx]                   # (B, C_out)
    y = jnp.einsum("boc,bcp->bop", w_sel, x_f) + b_sel[:, :, None]
    return y.reshape(B, w_sel.shape[1], H, W)


if __name__ == "__main__":
    key = jax.random.PRNGKey(0)
    k_x, k_w, k_b, k_idx = jax.random.split(key, 4)

    B, C, H, W = 4, 8, 16, 16
    num_blocks = 3

    x = jax.random.normal(k_x, (B, C, H, W), dtype=jnp.float32)
    # Parameters of each block (Conv2d 1x1: weight (C_out, C_in), bias (C_out,)).
    weights = jax.random.normal(k_w, (num_blocks, C, C), dtype=jnp.float32) * 0.1
    biases = jax.random.normal(k_b, (num_blocks, C), dtype=jnp.float32) * 0.1
    # Random per-sample block choice (equal_split=False path of the module),
    # made deterministic via the JAX PRNG.
    # TODO(synk): the module's host-side RNG (random.choice / equal_split
    # shuffling) has no in-kernel equivalent; indices are supplied as input.
    block_idx = jax.random.randint(k_idx, (B,), 0, num_blocks, dtype=jnp.int32)

    ref = _reference(x, weights, biases, block_idx)

    # Auto path (grouped / weight-resident at this small shape).
    out = blocks_bunch_forward(x, weights, biases, block_idx)
    out = jax.block_until_ready(out)
    assert out.shape == (B, C, H, W)
    assert jnp.allclose(out, ref, atol=1e-5, rtol=1e-5)

    # Also exercise the per-sample gathered path (used for large shapes).
    out_ps = blocks_bunch_forward(x, weights, biases, block_idx,
                                  force_path="per_sample")
    out_ps = jax.block_until_ready(out_ps)
    assert jnp.allclose(out_ps, ref, atol=1e-5, rtol=1e-5)

    print("KERNEL_OK")
</pallas_src>

<mosaic_0001>
module attributes {stable_mosaic.version = 11 : i64} {
  func.func @_grouped_kernel(%arg0: i32, %arg1: memref<4xi32, #tpu.memory_space<smem>>, %arg2: memref<4x8x256xf32, #tpu.memory_space<vmem>>, %arg3: memref<3x8x8xf32, #tpu.memory_space<vmem>>, %arg4: memref<3x8x1xf32, #tpu.memory_space<vmem>>, %arg5: memref<4x8x256xf32, #tpu.memory_space<vmem>>) attributes {dimension_semantics = [#tpu.dimension_semantics<parallel>], iteration_bounds = array<i64: 1>, scalar_prefetch = 1 : i64, scratch_operands = 0 : i64, tpu.core_type = #tpu.core_type<tc>, window_params = [{transform_indices = @transform_0, window_bounds = array<i64: 4, 8, 256>}, {pipeline_mode = #tpu.pipeline_mode<synchronous>, transform_indices = @transform_1, window_bounds = array<i64: 3, 8, 8>}, {pipeline_mode = #tpu.pipeline_mode<synchronous>, transform_indices = @transform_2, window_bounds = array<i64: 3, 8, 1>}, {transform_indices = @transform_3, window_bounds = array<i64: 4, 8, 256>}]} {
    %c4_i32 = arith.constant 4 : i32
    %0 = arith.muli %arg0, %c4_i32 : i32
    %c0_i32 = arith.constant 0 : i32
    %1 = arith.addi %0, %c0_i32 : i32
    %c3_i32 = arith.constant 3 : i32
    %2 = arith.minsi %1, %c3_i32 : i32
    %3 = arith.index_cast %2 : i32 to index
    %4 = memref.load %arg1[%3] : memref<4xi32, #tpu.memory_space<smem>>
    %5 = arith.index_cast %4 : i32 to index
    %c0 = arith.constant 0 : index
    %c0_0 = arith.constant 0 : index
    %6 = vector.load %arg3[%5, %c0, %c0_0] : memref<3x8x8xf32, #tpu.memory_space<vmem>>, vector<1x8x8xf32>
    %7 = vector.shape_cast %6 : vector<1x8x8xf32> to vector<8x8xf32>
    %c0_1 = arith.constant 0 : index
    %c0_2 = arith.constant 0 : index
    %c0_3 = arith.constant 0 : index
    %8 = vector.load %arg2[%c0_1, %c0_2, %c0_3] : memref<4x8x256xf32, #tpu.memory_space<vmem>>, vector<1x8x256xf32>
    %9 = vector.shape_cast %8 : vector<1x8x256xf32> to vector<8x256xf32>
    %cst = arith.constant dense<0.000000e+00> : vector<8x256xf32>
    %10 = tpu.matmul %7, %9, %cst {dimension_numbers = #tpu.dot_dimension_numbers<[1], [0], [0], [1], [0, 0, 1, 1], [], []>} : vector<8x8xf32>, vector<8x256xf32>, vector<8x256xf32> -> vector<8x256xf32>
    %11 = arith.index_cast %4 : i32 to index
    %c0_4 = arith.constant 0 : index
    %c0_5 = arith.constant 0 : index
    %12 = vector.load %arg4[%11, %c0_4, %c0_5] : memref<3x8x1xf32, #tpu.memory_space<vmem>>, vector<1x8x1xf32>
    %13 = vector.shape_cast %12 : vector<1x8x1xf32> to vector<8x1xf32>
    %14 = vector.broadcast %13 : vector<8x1xf32> to vector<8x256xf32>
    %15 = arith.addf %10, %14 : vector<8x256xf32>
    %c0_6 = arith.constant 0 : index
    %c0_7 = arith.constant 0 : index
    %c0_8 = arith.constant 0 : index
    %16 = vector.load %arg5[%c0_6, %c0_7, %c0_8] : memref<4x8x256xf32, #tpu.memory_space<vmem>>, vector<1x8x256xf32>
    %17 = vector.shape_cast %16 : vector<1x8x256xf32> to vector<8x256xf32>
    %18 = vector.shape_cast %15 : vector<8x256xf32> to vector<1x8x256xf32>
    tpu.vector_store %arg5[%c0_6, %c0_7, %c0_8], %18 {strides = array<i32>} : memref<4x8x256xf32, #tpu.memory_space<vmem>>, vector<1x8x256xf32>,
    %c4_i32_9 = arith.constant 4 : i32
    %19 = arith.muli %arg0, %c4_i32_9 : i32
    %c1_i32 = arith.constant 1 : i32
    %20 = arith.addi %19, %c1_i32 : i32
    %c3_i32_10 = arith.constant 3 : i32
    %21 = arith.minsi %20, %c3_i32_10 : i32
    %22 = arith.index_cast %21 : i32 to index
    %23 = memref.load %arg1[%22] : memref<4xi32, #tpu.memory_space<smem>>
    %24 = arith.index_cast %23 : i32 to index
    %c0_11 = arith.constant 0 : index
    %c0_12 = arith.constant 0 : index
    %25 = vector.load %arg3[%24, %c0_11, %c0_12] : memref<3x8x8xf32, #tpu.memory_space<vmem>>, vector<1x8x8xf32>
    %26 = vector.shape_cast %25 : vector<1x8x8xf32> to vector<8x8xf32>
    %c1 = arith.constant 1 : index
    %c0_13 = arith.constant 0 : index
    %c0_14 = arith.constant 0 : index
    %27 = vector.load %arg2[%c1, %c0_13, %c0_14] : memref<4x8x256xf32, #tpu.memory_space<vmem>>, vector<1x8x256xf32>
    %28 = vector.shape_cast %27 : vector<1x8x256xf32> to vector<8x256xf32>
    %cst_15 = arith.constant dense<0.000000e+00> : vector<8x256xf32>
    %29 = tpu.matmul %26, %28, %cst_15 {dimension_numbers = #tpu.dot_dimension_numbers<[1], [0], [0], [1], [0, 0, 1, 1], [], []>} : vector<8x8xf32>, vector<8x256xf32>, vector<8x256xf32> -> vector<8x256xf32>
    %30 = arith.index_cast %23 : i32 to index
    %c0_16 = arith.constant 0 : index
    %c0_17 = arith.constant 0 : index
    %31 = vector.load %arg4[%30, %c0_16, %c0_17] : memref<3x8x1xf32, #tpu.memory_space<vmem>>, vector<1x8x1xf32>
    %32 = vector.shape_cast %31 : vector<1x8x1xf32> to vector<8x1xf32>
    %33 = vector.broadcast %32 : vector<8x1xf32> to vector<8x256xf32>
    %34 = arith.addf %29, %33 : vector<8x256xf32>
    %c1_18 = arith.constant 1 : index
    %c0_19 = arith.constant 0 : index
    %c0_20 = arith.constant 0 : index
    %35 = vector.load %arg5[%c1_18, %c0_19, %c0_20] : memref<4x8x256xf32, #tpu.memory_space<vmem>>, vector<1x8x256xf32>
    %36 = vector.shape_cast %35 : vector<1x8x256xf32> to vector<8x256xf32>
    %37 = vector.shape_cast %34 : vector<8x256xf32> to vector<1x8x256xf32>
    tpu.vector_store %arg5[%c1_18, %c0_19, %c0_20], %37 {strides = array<i32>} : memref<4x8x256xf32, #tpu.memory_space<vmem>>, vector<1x8x256xf32>,
    %c4_i32_21 = arith.constant 4 : i32
    %38 = arith.muli %arg0, %c4_i32_21 : i32
    %c2_i32 = arith.constant 2 : i32
    %39 = arith.addi %38, %c2_i32 : i32
    %c3_i32_22 = arith.constant 3 : i32
    %40 = arith.minsi %39, %c3_i32_22 : i32
    %41 = arith.index_cast %40 : i32 to index
    %42 = memref.load %arg1[%41] : memref<4xi32, #tpu.memory_space<smem>>
    %43 = arith.index_cast %42 : i32 to index
    %c0_23 = arith.constant 0 : index
    %c0_24 = arith.constant 0 : index
    %44 = vector.load %arg3[%43, %c0_23, %c0_24] : memref<3x8x8xf32, #tpu.memory_space<vmem>>, vector<1x8x8xf32>
    %45 = vector.shape_cast %44 : vector<1x8x8xf32> to vector<8x8xf32>
    %c2 = arith.constant 2 : index
    %c0_25 = arith.constant 0 : index
    %c0_26 = arith.constant 0 : index
    %46 = vector.load %arg2[%c2, %c0_25, %c0_26] : memref<4x8x256xf32, #tpu.memory_space<vmem>>, vector<1x8x256xf32>
    %47 = vector.shape_cast %46 : vector<1x8x256xf32> to vector<8x256xf32>
    %cst_27 = arith.constant dense<0.000000e+00> : vector<8x256xf32>
    %48 = tpu.matmul %45, %47, %cst_27 {dimension_numbers = #tpu.dot_dimension_numbers<[1], [0], [0], [1], [0, 0, 1, 1], [], []>} : vector<8x8xf32>, vector<8x256xf32>, vector<8x256xf32> -> vector<8x256xf32>
    %49 = arith.index_cast %42 : i32 to index
    %c0_28 = arith.constant 0 : index
    %c0_29 = arith.constant 0 : index
    %50 = vector.load %arg4[%49, %c0_28, %c0_29] : memref<3x8x1xf32, #tpu.memory_space<vmem>>, vector<1x8x1xf32>
    %51 = vector.shape_cast %50 : vector<1x8x1xf32> to vector<8x1xf32>
    %52 = vector.broadcast %51 : vector<8x1xf32> to vector<8x256xf32>
    %53 = arith.addf %48, %52 : vector<8x256xf32>
    %c2_30 = arith.constant 2 : index
    %c0_31 = arith.constant 0 : index
    %c0_32 = arith.constant 0 : index
    %54 = vector.load %arg5[%c2_30, %c0_31, %c0_32] : memref<4x8x256xf32, #tpu.memory_space<vmem>>, vector<1x8x256xf32>
    %55 = vector.shape_cast %54 : vector<1x8x256xf32> to vector<8x256xf32>
    %56 = vector.shape_cast %53 : vector<8x256xf32> to vector<1x8x256xf32>
    tpu.vector_store %arg5[%c2_30, %c0_31, %c0_32], %56 {strides = array<i32>} : memref<4x8x256xf32, #tpu.memory_space<vmem>>, vector<1x8x256xf32>,
    %c4_i32_33 = arith.constant 4 : i32
    %57 = arith.muli %arg0, %c4_i32_33 : i32
    %c3_i32_34 = arith.constant 3 : i32
    %58 = arith.addi %57, %c3_i32_34 : i32
    %c3_i32_35 = arith.constant 3 : i32
    %59 = arith.minsi %58, %c3_i32_35 : i32
    %60 = arith.index_cast %59 : i32 to index
    %61 = memref.load %arg1[%60] : memref<4xi32, #tpu.memory_space<smem>>
    %62 = arith.index_cast %61 : i32 to index
    %c0_36 = arith.constant 0 : index
    %c0_37 = arith.constant 0 : index
    %63 = vector.load %arg3[%62, %c0_36, %c0_37] : memref<3x8x8xf32, #tpu.memory_space<vmem>>, vector<1x8x8xf32>
    %64 = vector.shape_cast %63 : vector<1x8x8xf32> to vector<8x8xf32>
    %c3 = arith.constant 3 : index
    %c0_38 = arith.constant 0 : index
    %c0_39 = arith.constant 0 : index
    %65 = vector.load %arg2[%c3, %c0_38, %c0_39] : memref<4x8x256xf32, #tpu.memory_space<vmem>>, vector<1x8x256xf32>
    %66 = vector.shape_cast %65 : vector<1x8x256xf32> to vector<8x256xf32>
    %cst_40 = arith.constant dense<0.000000e+00> : vector<8x256xf32>
    %67 = tpu.matmul %64, %66, %cst_40 {dimension_numbers = #tpu.dot_dimension_numbers<[1], [0], [0], [1], [0, 0, 1, 1], [], []>} : vector<8x8xf32>, vector<8x256xf32>, vector<8x256xf32> -> vector<8x256xf32>
    %68 = arith.index_cast %61 : i32 to index
    %c0_41 = arith.constant 0 : index
    %c0_42 = arith.constant 0 : index
    %69 = vector.load %arg4[%68, %c0_41, %c0_42] : memref<3x8x1xf32, #tpu.memory_space<vmem>>, vector<1x8x1xf32>
    %70 = vector.shape_cast %69 : vector<1x8x1xf32> to vector<8x1xf32>
    %71 = vector.broadcast %70 : vector<8x1xf32> to vector<8x256xf32>
    %72 = arith.addf %67, %71 : vector<8x256xf32>
    %c3_43 = arith.constant 3 : index
    %c0_44 = arith.constant 0 : index
    %c0_45 = arith.constant 0 : index
    %73 = vector.load %arg5[%c3_43, %c0_44, %c0_45] : memref<4x8x256xf32, #tpu.memory_space<vmem>>, vector<1x8x256xf32>
    %74 = vector.shape_cast %73 : vector<1x8x256xf32> to vector<8x256xf32>
    %75 = vector.shape_cast %72 : vector<8x256xf32> to vector<1x8x256xf32>
    tpu.vector_store %arg5[%c3_43, %c0_44, %c0_45], %75 {strides = array<i32>} : memref<4x8x256xf32, #tpu.memory_space<vmem>>, vector<1x8x256xf32>,
    return
  }
  func.func @transform_0(%arg0: i32, %arg1: memref<4xi32, #tpu.memory_space<smem>>) -> (i32, i32, i32) {
    %c0_i32 = arith.constant 0 : i32
    %c0_i32_0 = arith.constant 0 : i32
    %c0_i32_1 = arith.constant 0 : i32
    return %arg0, %c0_i32, %c0_i32_0 : i32, i32, i32
  }
  func.func @transform_1(%arg0: i32, %arg1: memref<4xi32, #tpu.memory_space<smem>>) -> (i32, i32, i32) {
    %c0_i32 = arith.constant 0 : i32
    %c0_i32_0 = arith.constant 0 : i32
    %c0_i32_1 = arith.constant 0 : i32
    %c0_i32_2 = arith.constant 0 : i32
    return %c0_i32, %c0_i32_0, %c0_i32_1 : i32, i32, i32
  }
  func.func @transform_2(%arg0: i32, %arg1: memref<4xi32, #tpu.memory_space<smem>>) -> (i32, i32, i32) {
    %c0_i32 = arith.constant 0 : i32
    %c0_i32_0 = arith.constant 0 : i32
    %c0_i32_1 = arith.constant 0 : i32
    %c0_i32_2 = arith.constant 0 : i32
    return %c0_i32, %c0_i32_0, %c0_i32_1 : i32, i32, i32
  }
  func.func @transform_3(%arg0: i32, %arg1: memref<4xi32, #tpu.memory_space<smem>>) -> (i32, i32, i32) {
    %c0_i32 = arith.constant 0 : i32
    %c0_i32_0 = arith.constant 0 : i32
    %c0_i32_1 = arith.constant 0 : i32
    return %arg0, %c0_i32, %c0_i32_0 : i32, i32, i32
  }
}

</mosaic_0001>

<bundles_post_ra>
// kernel: blocks_bunch_forward.1
= control target key start
LH: loop header
LB: loop body
LE: loop exit
PB: predicated region body
PF: predicated region fallthrough
CT: control target
= control target key end

     0   :  { %s577_s0 = inlined_call_operand.vmem [shape: s32[4], index: 0, kind: input, shape index: {}]   ;;  %s578_s1 = inlined_call_operand.vmem [shape: f32[4,8,256], index: 1, kind: input, shape index: {}]   ;;  %s579_s2 = inlined_call_operand.vmem [shape: f32[3,8,8], index: 2, kind: input, shape index: {}]   ;;  %s580_s3 = inlined_call_operand.vmem [shape: f32[3,8,1], index: 3, kind: input, shape index: {}]   ;;  %s581_s4 = inlined_call_operand.vmem [shape: f32[4,8,256], index: 4, kind: output, shape index: {}]  }
   0x1   :  { %s9_s17 = sshll.u32 %s577_s0, 4  ;;  %s10_s17 = int_to_ptr.vmem [resolvable:$true] %s9_s17 }
   0x2   :  { %s444_s18 = scalar_lea.vmem %s10_s17, 16  ;;  %p449_p1 = scmp.lt.s32.totalorder %s10_s17, %s10_s17 }
   0x3   :  { %p445_p0 = scmp.ne.s32.totalorder %s10_s17, %s444_s18  ;;  %p450_p2 = scmp.lt.s32.totalorder %s444_s18, %s444_s18 }
   0x5   :  { %p451_p3 = por %p450_p2, %p449_p1 }
   0x7   :  { %p452_p4 = pnand %p451_p3, %p445_p0 }
   0x9   :  { %455 = shalt.err (!%p452_p4)  }
   0xa   :  { %s458_s19 = smov [#allocation3]  }
   0xb   :  { %12 = dma.vmem_to_smem %s10_s17, 16, %s458_s19, [#allocation2] }
   0xc   :  { %456 = dma.done.wait [#allocation2], 16 }
   0xd   :  { %457 = vsyncadd [#allocation2], 4294967280 }
   0xe   :  { %14 = sfence }
   0xf   :  { %v29_v0 = vld [vmem:[%s578_s1 + $0x8] sm:$0xff]  ;;  %v421_v1 = vld [vmem:[%s578_s1 + $0x18] sm:$0xff]  ;;  %v28_v2 = vld [vmem:[%s578_s1] sm:$0xff]  ;;  %s498_s25 = sld [smem:[#allocation3]]  ;;  %s509_s6 = sld [smem:[#allocation3 + $0x1]]  ;;  %v459_v6 = vmov 0.0  }
  0x10   :  { %41 = vmatprep.subr.mxu0 %v29_v0  ;;  %134 = vmatprep.subr.mxu1 %v421_v1  ;;  %v420_v3 = vld [vmem:[%s578_s1 + $0x10] sm:$0xff]  ;;  %v428_v4 = vld [vmem:[%s578_s1 + $0x28] sm:$0xff]  ;;  %v435_v5 = vld [vmem:[%s578_s1 + $0x38] sm:$0xff]  ;;  %s511_s7 = sld [smem:[#allocation3 + $0x2]]  ;;  %s513_s8 = sld [smem:[#allocation3 + $0x3]]  ;;  %v460_v7 = vmov 0  }
  0x11   :  { %42 = vmatpush1.msra.mxu0 %v28_v2  ;;  %135 = vmatpush1.msra.mxu1 %v420_v3  ;;  %vm37_vm0 = vcmask 64512   ;;  %v427_v8 = vld [vmem:[%s578_s1 + $0x20] sm:$0xff]  ;;  %v434_v10 = vld [vmem:[%s578_s1 + $0x30] sm:$0xff] }
  0x12   :  { %105 = vmatprep.mubr.f32.mxu0 %v459_v6  ;;  %198 = vmatprep.mubr.f32.mxu1 %v459_v6 }
  0x13   :  { %228 = vmatprep.subr.mxu0 %v428_v4  ;;  %322 = vmatprep.subr.mxu1 %v435_v5 }
  0x14   :  { %442 = vset.pattern.permute.xlu0 %v460_v7  ;;  %443 = vset.pattern.permute.xlu1 %v460_v7 }
  0x15   :  { %s416_s9 = sshll.u32 %s498_s25, 3  ;;  %s419_s13 = sshll.u32 %s509_s6, 3 }
  0x16   :  { %s26_s12 = scalar_lea.vmem %s579_s2, %s416_s9  ;;  %s119_s18 = scalar_lea.vmem %s579_s2, %s419_s13 }
  0x17   :  { %v27_v9 = vld [vmem:[%s26_s12] sm:$0xff]  ;;  %s426_s21 = sshll.u32 %s511_s7, 3  ;;  %s433_s24 = sshll.u32 %s513_s8, 3 }
  0x18   :  { %417 = vmatmul.mubr.msk.f32.vlgmr.msra.gmra.mrb[0].mxu0 %vm37_vm0, %v27_v9  ;;  %v120_v11 = vld [vmem:[%s119_s18] sm:$0xff]  ;;  %s213_s0 = scalar_lea.vmem %s579_s2, %s426_s21  ;;  %s307_s27 = scalar_lea.vmem %s579_s2, %s433_s24 }
  0x19   :  { %422 = vmatmul.mubr.msk.f32.vlgmr.msra.gmra.mrb[0].mxu1 %vm37_vm0, %v120_v11  ;;  %229 = vmatpush1.msra.mxu0 %v427_v8  ;;  %v214_v12 = vld [vmem:[%s213_s0] sm:$0xff]  ;;  %s30_s1 = scalar_lea.vmem %s580_s3, %s416_s9  ;;  %s218_s6 = scalar_lea.vmem %s580_s3, %s426_s21 }
  0x1a   :  { %323 = vmatpush1.msra.mxu1 %v434_v10  ;;  %292 = vmatprep.mubr.f32.mxu0 %v459_v6  ;;  %v308_v13 = vld [vmem:[%s307_s27] sm:$0xff]  ;;  %s124_s10 = scalar_lea.vmem %s580_s3, %s419_s13  ;;  %s312_s12 = scalar_lea.vmem %s580_s3, %s433_s24 }
  0x1b   :  { %v31_v14 = vld [vmem:[%s30_s1] sm:$0xff]  ;;  %386 = vmatprep.mubr.f32.mxu1 %v459_v6 }
  0x1c   :  { %34 = vperm.xlu0 %442, %v31_v14   ;;  %v219_v15 = vld [vmem:[%s218_s6] sm:$0xff]  ;;  %429 = vmatmul.mubr.msk.f32.vlgmr.msra.gmra.mrb[2].mxu0 %vm37_vm0, %v214_v12 }
  0x1d   :  { %222 = vperm.xlu1 %443, %v219_v15   ;;  %v125_v16 = vld [vmem:[%s124_s10] sm:$0xff]  ;;  %436 = vmatmul.mubr.msk.f32.vlgmr.msra.gmra.mrb[2].mxu1 %vm37_vm0, %v308_v13 }
  0x1e   :  { %v313_v17 = vld [vmem:[%s312_s12] sm:$0xff] }
  0x20   :  { %128 = vperm.xlu0 %442, %v125_v16  }
  0x21   :  { %316 = vperm.xlu1 %443, %v313_v17  }
  0x9b   :  { %v35_v18 = vpop.permute.xlu0 %34 }
  0x9c   :  { %v223_v19 = vpop.permute.xlu1 %222 }
  0x9f   :  { %v129_v20 = vpop.permute.xlu0 %128 }
  0xa0   :  { %v317_v29 = vpop.permute.xlu1 %316 }
  0xeb   :  { %v107_v21 = vpop.f32.mrb[0].mxu0 }
  0xec   :  { %v200_v22 = vpop.f32.mrb[0].mxu1  ;;  %v108_v23 = vadd.f32 %v107_v21, %v35_v18  ;;  %v109_v24 = vpop.f32.mrb[1].mxu0 }
  0xed   :  { %v201_v25 = vadd.f32 %v200_v22, %v129_v20  ;;  %v202_v26 = vpop.f32.mrb[1].mxu1  ;;  %v110_v27 = vadd.f32 %v109_v24, %v35_v18 }
  0xee   :  { %112 = vst [vmem:[%s581_s4] sm:$0xff] %v108_v23  ;;  %v203_v28 = vadd.f32 %v202_v26, %v129_v20 }
  0xef   :  { %423 = vst [vmem:[%s581_s4 + $0x10] sm:$0xff] %v201_v25  ;;  %113 = vst [vmem:[%s581_s4 + $0x8] sm:$0xff] %v110_v27  ;;  %v294_v30 = vpop.f32.mrb[2].mxu0 }
  0xf0   :  { %424 = vst [vmem:[%s581_s4 + $0x18] sm:$0xff] %v203_v28  ;;  %v295_v31 = vadd.f32 %v294_v30, %v223_v19  ;;  %v388_v32 = vpop.f32.mrb[2].mxu1  ;;  %v296_v33 = vpop.f32.mrb[3].mxu0 }
  0xf1   :  { %v389_v34 = vadd.f32 %v388_v32, %v317_v29  ;;  %v297_v35 = vadd.f32 %v296_v33, %v223_v19  ;;  %v390_v36 = vpop.f32.mrb[3].mxu1 }
  0xf2   :  { %430 = vst [vmem:[%s581_s4 + $0x20] sm:$0xff] %v295_v31  ;;  %v391_v37 = vadd.f32 %v390_v36, %v317_v29 }
  0xf3   :  { %437 = vst [vmem:[%s581_s4 + $0x30] sm:$0xff] %v389_v34  ;;  %431 = vst [vmem:[%s581_s4 + $0x28] sm:$0xff] %v297_v35 }
  0xf4   :  { %438 = vst [vmem:[%s581_s4 + $0x38] sm:$0xff] %v391_v37 }

</bundles_post_ra>
